<compile_context>
chip_gen: v5e
topology: v5e:2x2
jax: 0.10.0
libtpu: 0.0.40
codegen_flags: <defaults>
</compile_context>

<pallas_src>
import functools

import jax
import jax.numpy as jnp
from jax.experimental import pallas as pl
from jax.experimental.pallas import tpu as pltpu


_ACT_NAMES = ("relu", "tanh", "sigmoid", "leakyrelu")


# ----------------------------------------------------------------------------
# Config parsing (mirrors Learner.__init__ / Learner.forward's loop)
# ----------------------------------------------------------------------------
def parse_mlp_config(config):
    """Parse the Learner config into fused (linear + activations) layers.

    Returns (needs_flatten, layers); each layer is {'out','in','acts'} with
    acts = list of (act_name, negative_slope).
    """
    layers = []
    needs_flatten = False
    for name, param in config:
        if name == "flatten":
            if layers:
                raise NotImplementedError("flatten after a linear layer")
            needs_flatten = True
        elif name == "linear":
            out_f, in_f = param
            layers.append({"out": int(out_f), "in": int(in_f), "acts": []})
        elif name in _ACT_NAMES:
            if not layers:
                raise NotImplementedError("activation before first linear")
            slope = float(param[0]) if name == "leakyrelu" else 0.0
            layers[-1]["acts"].append((name, slope))
        else:
            # TODO(synk): conv2d / bn / pooling / upsample / reshape branches
            # of Learner are not exercised by the BMAML regression MLP config.
            raise NotImplementedError(name)
    return needs_flatten, layers


# ----------------------------------------------------------------------------
# One-time parameter packing (call OUTSIDE the adaptation inner loop)
# ----------------------------------------------------------------------------
def pack_particle_params(config, stacked_vars):
    """Torch-layout stacked params -> kernel-friendly persistent layout.

    stacked_vars: [w0 (P, out0, in0), b0 (P, out0), w1, b1, ...]
    Returns      : [w0 (P, in0, out0), b0 (P, 1, out0), ...]
    """
    _, layers = parse_mlp_config(config)
    assert len(stacked_vars) == 2 * len(layers), "variable count mismatch"
    packed = []
    for li, layer in enumerate(layers):
        w = stacked_vars[2 * li]
        b = stacked_vars[2 * li + 1]
        p = w.shape[0]
        assert w.shape == (p, layer["out"], layer["in"]), (w.shape, layer)
        assert b.shape == (p, layer["out"]), (b.shape, layer)
        packed.append(jnp.swapaxes(w, 1, 2))            # (P, in, out)
        packed.append(b.reshape(p, 1, layer["out"]))    # (P, 1, out)
    return packed


# ----------------------------------------------------------------------------
# Pallas kernel: whole MLP x (a block of) particles fused in one grid step
# ----------------------------------------------------------------------------
def _fused_mlp_kernel(*refs, layer_acts, n_particles, compute_dtype):
    # refs = (x_ref, w0_ref, b0_ref, w1_ref, b1_ref, ..., o_ref)
    # x_ref : (B, Din)                  shared across particles
    # wK_ref: (P_blk, DinK, DoutK)      pre-transposed once at pack time
    # bK_ref: (P_blk, 1, DoutK)
    # o_ref : (P_blk, B, Dout_last)
    x_ref = refs[0]
    o_ref = refs[-1]
    p_refs = refs[1:-1]

    x = x_ref[...]
    for p in range(n_particles):            # static unroll over particle block
        h = x
        for li, acts in enumerate(layer_acts):
            w = p_refs[2 * li][p]            # (Din, Dout)
            b = p_refs[2 * li + 1][p]        # (1, Dout)
            h = jnp.dot(h.astype(compute_dtype), w.astype(compute_dtype),
                        preferred_element_type=jnp.float32)
            h = h + b.astype(jnp.float32)
            for act, slope in acts:
                if act == "relu":
                    h = jnp.maximum(h, 0.0)
                elif act == "tanh":
                    h = jnp.tanh(h)
                elif act == "sigmoid":
                    h = jax.nn.sigmoid(h)
                elif act == "leakyrelu":
                    h = jnp.where(h >= 0.0, h, slope * h)
        o_ref[p] = h.astype(o_ref.dtype)


# ----------------------------------------------------------------------------
# Wrapper: a pure pallas_call (no per-call padding / transposes)
# ----------------------------------------------------------------------------
def learner_forward_particles(x, config, packed_vars, *, particle_block=None,
                              compute_dtype=jnp.float32):
    """Fused Learner.forward for P stacked parameter sets (SVGD particles).

    x           : (B, Din) task inputs shared across particles.
    packed_vars : output of pack_particle_params (persistent layout).
    particle_block: particles per grid step. None -> all P in one step
                    (recommended on v5e/v6e). Use P//2 on v7x to feed both TCs.
    Returns (P, B, Dout_last).
    """
    needs_flatten, layers = parse_mlp_config(config)
    if needs_flatten:
        x = x.reshape(x.shape[0], -1)
    assert len(packed_vars) == 2 * len(layers), "variable count mismatch"

    P = packed_vars[0].shape[0]
    B, din0 = x.shape
    assert din0 == layers[0]["in"], (x.shape, layers[0])

    if particle_block is None:
        particle_block = P
    assert P % particle_block == 0, (P, particle_block)
    n_blocks = P // particle_block

    kernel_args = [x]
    in_specs = [pl.BlockSpec((B, din0), lambda i: (0, 0))]
    layer_acts = []
    for li, layer in enumerate(layers):
        w = packed_vars[2 * li]
        b = packed_vars[2 * li + 1]
        in_f, out_f = layer["in"], layer["out"]
        assert w.shape == (P, in_f, out_f), (w.shape, layer)
        assert b.shape == (P, 1, out_f), (b.shape, layer)
        kernel_args += [w, b]
        # Blocks keep the last two dims equal to the full array dims (allowed
        # even when not multiples of (8,128)); only the particle axis is split.
        in_specs += [
            pl.BlockSpec((particle_block, in_f, out_f), lambda i: (i, 0, 0)),
            pl.BlockSpec((particle_block, 1, out_f), lambda i: (i, 0, 0)),
        ]
        layer_acts.append(tuple(layer["acts"]))

    out_f = layers[-1]["out"]
    out_shape = jax.ShapeDtypeStruct((P, B, out_f), x.dtype)
    out_spec = pl.BlockSpec((particle_block, B, out_f), lambda i: (i, 0, 0))

    # Advisory cost estimate (real, unpadded dims).
    flops = 2 * P * B * sum(l["in"] * l["out"] for l in layers)
    transcendentals = P * B * sum(
        l["out"] for l in layers
        if any(a in ("tanh", "sigmoid") for a, _ in l["acts"]))
    bytes_accessed = sum(int(a.size) * a.dtype.itemsize for a in kernel_args)
    bytes_accessed += P * B * out_f * jnp.dtype(x.dtype).itemsize

    kernel = functools.partial(
        _fused_mlp_kernel,
        layer_acts=tuple(layer_acts),
        n_particles=particle_block,
        compute_dtype=compute_dtype)

    return pl.pallas_call(
        kernel,
        out_shape=out_shape,
        grid=(n_blocks,),
        in_specs=in_specs,
        out_specs=out_spec,
        compiler_params=pltpu.CompilerParams(
            dimension_semantics=("parallel",)),
        cost_estimate=pl.CostEstimate(
            flops=flops,
            transcendentals=transcendentals,
            bytes_accessed=bytes_accessed),
    )(*kernel_args)


def learner_forward(x, config, variables, compute_dtype=jnp.float32):
    """Single-parameter-set forward (API parity with Learner.forward)."""
    stacked = [v[None] for v in variables]
    packed = pack_particle_params(config, stacked)
    return learner_forward_particles(x, config, packed,
                                     compute_dtype=compute_dtype)[0]


# ----------------------------------------------------------------------------
# Parameter init (matches Learner.__init__ shapes; torch kaiming_normal_
# defaults: fan_in mode, gain sqrt(2) -> std = sqrt(2 / in_features))
# ----------------------------------------------------------------------------
def init_vars(config, key):
    params = []
    for name, param in config:
        if name == "linear":
            out_f, in_f = param
            key, wk = jax.random.split(key)
            std = (2.0 / in_f) ** 0.5
            w = std * jax.random.normal(wk, (out_f, in_f), dtype=jnp.float32)
            b = jnp.zeros((out_f,), dtype=jnp.float32)
            params.extend([w, b])
        elif name in _ACT_NAMES + ("flatten",):
            continue
        else:
            # TODO(synk): conv2d / bn branches of Learner.__init__ are not
            # exercised by the MLP config used in BMAML regression.
            raise NotImplementedError(name)
    return params


# ----------------------------------------------------------------------------
# Pure-jnp reference (same semantics as torch F.linear / activations)
# ----------------------------------------------------------------------------
def reference_forward(x, config, variables):
    idx = 0
    for name, param in config:
        if name == "linear":
            w, b = variables[idx], variables[idx + 1]
            idx += 2
            x = x @ w.T + b
        elif name == "relu":
            x = jnp.maximum(x, 0.0)
        elif name == "tanh":
            x = jnp.tanh(x)
        elif name == "sigmoid":
            x = jax.nn.sigmoid(x)
        elif name == "leakyrelu":
            x = jnp.where(x >= 0.0, x, param[0] * x)
        elif name == "flatten":
            x = x.reshape(x.shape[0], -1)
        else:
            raise NotImplementedError(name)
    assert idx == len(variables)
    return x


if __name__ == "__main__":
    IN_DIM, HIDDEN, OUT_DIM, BATCH, PARTICLES = 8, 32, 4, 8, 4

    # BMAML-style regression MLP config: (out_features, in_features) per linear.
    config = [
        ("linear", [HIDDEN, IN_DIM]),
        ("relu", [True]),
        ("linear", [HIDDEN, HIDDEN]),
        ("relu", [True]),
        ("linear", [OUT_DIM, HIDDEN]),
    ]

    key = jax.random.PRNGKey(0)
    key, xk = jax.random.split(key)
    x = jax.random.normal(xk, (BATCH, IN_DIM), dtype=jnp.float32)

    # Per-particle parameter sets (as BMAML's SVGD particles would be).
    per_particle = []
    for _ in range(PARTICLES):
        key, pk = jax.random.split(key)
        per_particle.append(init_vars(config, pk))
    n_vars = len(per_particle[0])
    stacked = [jnp.stack([pv[i] for pv in per_particle]) for i in range(n_vars)]

    # One-time layout packing (outside the adaptation inner loop).
    packed = pack_particle_params(config, stacked)

    # 1) Fully collapsed grid (single step), f32.
    fwd = jax.jit(lambda xx, *pv: learner_forward_particles(xx, config, list(pv)))
    out = jax.block_until_ready(fwd(x, *packed))
    assert out.shape == (PARTICLES, BATCH, OUT_DIM), out.shape
    for pi in range(PARTICLES):
        ref = reference_forward(x, config, per_particle[pi])
        assert jnp.allclose(out[pi], ref, atol=1e-5, rtol=1e-5), f"particle {pi} mismatch"

    # 2) v7x-friendly 2-wide parallel particle split (2 particles / grid step).
    fwd2 = jax.jit(lambda xx, *pv: learner_forward_particles(
        xx, config, list(pv), particle_block=PARTICLES // 2))
    out2 = jax.block_until_ready(fwd2(x, *packed))
    for pi in range(PARTICLES):
        ref = reference_forward(x, config, per_particle[pi])
        assert jnp.allclose(out2[pi], ref, atol=1e-5, rtol=1e-5), f"blk2 particle {pi}"

    # 3) bf16 compute path (MXU-native on v6e/v7x), f32 accumulation.
    fwd_bf16 = jax.jit(lambda xx, *pv: learner_forward_particles(
        xx, config, list(pv), compute_dtype=jnp.bfloat16))
    out_bf16 = jax.block_until_ready(fwd_bf16(x, *packed))
    for pi in range(PARTICLES):
        ref = reference_forward(x, config, per_particle[pi])
        assert jnp.allclose(out_bf16[pi], ref, atol=5e-2, rtol=5e-2), f"bf16 particle {pi}"

    # 4) Activation coverage: leakyrelu / tanh / sigmoid branches.
    config2 = [
        ("linear", [HIDDEN, IN_DIM]),
        ("leakyrelu", [0.1, True]),
        ("linear", [HIDDEN, HIDDEN]),
        ("tanh", [True]),
        ("linear", [OUT_DIM, HIDDEN]),
        ("sigmoid", [True]),
    ]
    key, pk = jax.random.split(key)
    vars2 = init_vars(config2, pk)
    out_act = jax.block_until_ready(
        jax.jit(lambda xx, *vv: learner_forward(xx, config2, list(vv)))(x, *vars2))
    ref_act = reference_forward(x, config2, vars2)
    assert out_act.shape == (BATCH, OUT_DIM), out_act.shape
    assert jnp.allclose(out_act, ref_act, atol=1e-4, rtol=1e-4), "activation-config mismatch"

    # 5) Single parameter-set path (Learner.forward(x, vars) parity).
    out1 = jax.block_until_ready(
        jax.jit(lambda xx, *vv: learner_forward(xx, config, list(vv)))(x, *per_particle[0]))
    ref1 = reference_forward(x, config, per_particle[0])
    assert out1.shape == (BATCH, OUT_DIM), out1.shape
    assert jnp.allclose(out1, ref1, atol=1e-5, rtol=1e-5), "single-particle mismatch"

    print("KERNEL_OK")
</pallas_src>

<mosaic_0001>
module attributes {stable_mosaic.version = 11 : i64} {
  func.func @_fused_mlp_kernel(%arg0: i32, %arg1: memref<8x8xf32, #tpu.memory_space<vmem>>, %arg2: memref<4x8x32xf32, #tpu.memory_space<vmem>>, %arg3: memref<4x1x32xf32, #tpu.memory_space<vmem>>, %arg4: memref<4x32x32xf32, #tpu.memory_space<vmem>>, %arg5: memref<4x1x32xf32, #tpu.memory_space<vmem>>, %arg6: memref<4x32x4xf32, #tpu.memory_space<vmem>>, %arg7: memref<4x1x4xf32, #tpu.memory_space<vmem>>, %arg8: memref<4x8x4xf32, #tpu.memory_space<vmem>>) attributes {dimension_semantics = [#tpu.dimension_semantics<parallel>], iteration_bounds = array<i64: 1>, scalar_prefetch = 0 : i64, scratch_operands = 0 : i64, tpu.core_type = #tpu.core_type<tc>, window_params = [{pipeline_mode = #tpu.pipeline_mode<synchronous>, transform_indices = @transform_0, window_bounds = array<i64: 8, 8>}, {transform_indices = @transform_1, window_bounds = array<i64: 4, 8, 32>}, {transform_indices = @transform_2, window_bounds = array<i64: 4, 1, 32>}, {transform_indices = @transform_3, window_bounds = array<i64: 4, 32, 32>}, {transform_indices = @transform_4, window_bounds = array<i64: 4, 1, 32>}, {transform_indices = @transform_5, window_bounds = array<i64: 4, 32, 4>}, {transform_indices = @transform_6, window_bounds = array<i64: 4, 1, 4>}, {transform_indices = @transform_7, window_bounds = array<i64: 4, 8, 4>}]} {
    %c0 = arith.constant 0 : index
    %c0_0 = arith.constant 0 : index
    %0 = vector.load %arg1[%c0, %c0_0] : memref<8x8xf32, #tpu.memory_space<vmem>>, vector<8x8xf32>
    %c0_1 = arith.constant 0 : index
    %c0_2 = arith.constant 0 : index
    %c0_3 = arith.constant 0 : index
    %1 = vector.load %arg2[%c0_1, %c0_2, %c0_3] : memref<4x8x32xf32, #tpu.memory_space<vmem>>, vector<1x8x32xf32>
    %2 = vector.shape_cast %1 : vector<1x8x32xf32> to vector<8x32xf32>
    %c0_4 = arith.constant 0 : index
    %c0_5 = arith.constant 0 : index
    %c0_6 = arith.constant 0 : index
    %3 = vector.load %arg3[%c0_4, %c0_5, %c0_6] : memref<4x1x32xf32, #tpu.memory_space<vmem>>, vector<1x1x32xf32>
    %4 = vector.shape_cast %3 : vector<1x1x32xf32> to vector<1x32xf32>
    %cst = arith.constant dense<0.000000e+00> : vector<8x32xf32>
    %5 = tpu.matmul %0, %2, %cst {dimension_numbers = #tpu.dot_dimension_numbers<[1], [0], [0], [1], [0, 0, 1, 1], [], []>} : vector<8x8xf32>, vector<8x32xf32>, vector<8x32xf32> -> vector<8x32xf32>
    %6 = vector.broadcast %4 : vector<1x32xf32> to vector<8x32xf32>
    %7 = arith.addf %5, %6 : vector<8x32xf32>
    %cst_7 = arith.constant 0.000000e+00 : f32
    %8 = vector.broadcast %cst_7 : f32 to vector<8x32xf32>
    %9 = arith.maximumf %7, %8 : vector<8x32xf32>
    %c0_8 = arith.constant 0 : index
    %c0_9 = arith.constant 0 : index
    %c0_10 = arith.constant 0 : index
    %10 = vector.load %arg4[%c0_8, %c0_9, %c0_10] : memref<4x32x32xf32, #tpu.memory_space<vmem>>, vector<1x32x32xf32>
    %11 = vector.shape_cast %10 : vector<1x32x32xf32> to vector<32x32xf32>
    %c0_11 = arith.constant 0 : index
    %c0_12 = arith.constant 0 : index
    %c0_13 = arith.constant 0 : index
    %12 = vector.load %arg5[%c0_11, %c0_12, %c0_13] : memref<4x1x32xf32, #tpu.memory_space<vmem>>, vector<1x1x32xf32>
    %13 = vector.shape_cast %12 : vector<1x1x32xf32> to vector<1x32xf32>
    %cst_14 = arith.constant dense<0.000000e+00> : vector<8x32xf32>
    %14 = tpu.matmul %9, %11, %cst_14 {dimension_numbers = #tpu.dot_dimension_numbers<[1], [0], [0], [1], [0, 0, 1, 1], [], []>} : vector<8x32xf32>, vector<32x32xf32>, vector<8x32xf32> -> vector<8x32xf32>
    %15 = vector.broadcast %13 : vector<1x32xf32> to vector<8x32xf32>
    %16 = arith.addf %14, %15 : vector<8x32xf32>
    %cst_15 = arith.constant 0.000000e+00 : f32
    %17 = vector.broadcast %cst_15 : f32 to vector<8x32xf32>
    %18 = arith.maximumf %16, %17 : vector<8x32xf32>
    %c0_16 = arith.constant 0 : index
    %c0_17 = arith.constant 0 : index
    %c0_18 = arith.constant 0 : index
    %19 = vector.load %arg6[%c0_16, %c0_17, %c0_18] : memref<4x32x4xf32, #tpu.memory_space<vmem>>, vector<1x32x4xf32>
    %20 = vector.shape_cast %19 : vector<1x32x4xf32> to vector<32x4xf32>
    %c0_19 = arith.constant 0 : index
    %c0_20 = arith.constant 0 : index
    %c0_21 = arith.constant 0 : index
    %21 = vector.load %arg7[%c0_19, %c0_20, %c0_21] : memref<4x1x4xf32, #tpu.memory_space<vmem>>, vector<1x1x4xf32>
    %22 = vector.shape_cast %21 : vector<1x1x4xf32> to vector<1x4xf32>
    %cst_22 = arith.constant dense<0.000000e+00> : vector<8x4xf32>
    %23 = tpu.matmul %18, %20, %cst_22 {dimension_numbers = #tpu.dot_dimension_numbers<[1], [0], [0], [1], [0, 0, 1, 1], [], []>} : vector<8x32xf32>, vector<32x4xf32>, vector<8x4xf32> -> vector<8x4xf32>
    %24 = vector.broadcast %22 : vector<1x4xf32> to vector<8x4xf32>
    %25 = arith.addf %23, %24 : vector<8x4xf32>
    %c0_23 = arith.constant 0 : index
    %c0_24 = arith.constant 0 : index
    %c0_25 = arith.constant 0 : index
    %26 = vector.load %arg8[%c0_23, %c0_24, %c0_25] : memref<4x8x4xf32, #tpu.memory_space<vmem>>, vector<1x8x4xf32>
    %27 = vector.shape_cast %26 : vector<1x8x4xf32> to vector<8x4xf32>
    %28 = vector.shape_cast %25 : vector<8x4xf32> to vector<1x8x4xf32>
    tpu.vector_store %arg8[%c0_23, %c0_24, %c0_25], %28 {strides = array<i32>} : memref<4x8x4xf32, #tpu.memory_space<vmem>>, vector<1x8x4xf32>,
    %c1 = arith.constant 1 : index
    %c0_26 = arith.constant 0 : index
    %c0_27 = arith.constant 0 : index
    %29 = vector.load %arg2[%c1, %c0_26, %c0_27] : memref<4x8x32xf32, #tpu.memory_space<vmem>>, vector<1x8x32xf32>
    %30 = vector.shape_cast %29 : vector<1x8x32xf32> to vector<8x32xf32>
    %c1_28 = arith.constant 1 : index
    %c0_29 = arith.constant 0 : index
    %c0_30 = arith.constant 0 : index
    %31 = vector.load %arg3[%c1_28, %c0_29, %c0_30] : memref<4x1x32xf32, #tpu.memory_space<vmem>>, vector<1x1x32xf32>
    %32 = vector.shape_cast %31 : vector<1x1x32xf32> to vector<1x32xf32>
    %cst_31 = arith.constant dense<0.000000e+00> : vector<8x32xf32>
    %33 = tpu.matmul %0, %30, %cst_31 {dimension_numbers = #tpu.dot_dimension_numbers<[1], [0], [0], [1], [0, 0, 1, 1], [], []>} : vector<8x8xf32>, vector<8x32xf32>, vector<8x32xf32> -> vector<8x32xf32>
    %34 = vector.broadcast %32 : vector<1x32xf32> to vector<8x32xf32>
    %35 = arith.addf %33, %34 : vector<8x32xf32>
    %cst_32 = arith.constant 0.000000e+00 : f32
    %36 = vector.broadcast %cst_32 : f32 to vector<8x32xf32>
    %37 = arith.maximumf %35, %36 : vector<8x32xf32>
    %c1_33 = arith.constant 1 : index
    %c0_34 = arith.constant 0 : index
    %c0_35 = arith.constant 0 : index
    %38 = vector.load %arg4[%c1_33, %c0_34, %c0_35] : memref<4x32x32xf32, #tpu.memory_space<vmem>>, vector<1x32x32xf32>
    %39 = vector.shape_cast %38 : vector<1x32x32xf32> to vector<32x32xf32>
    %c1_36 = arith.constant 1 : index
    %c0_37 = arith.constant 0 : index
    %c0_38 = arith.constant 0 : index
    %40 = vector.load %arg5[%c1_36, %c0_37, %c0_38] : memref<4x1x32xf32, #tpu.memory_space<vmem>>, vector<1x1x32xf32>
    %41 = vector.shape_cast %40 : vector<1x1x32xf32> to vector<1x32xf32>
    %cst_39 = arith.constant dense<0.000000e+00> : vector<8x32xf32>
    %42 = tpu.matmul %37, %39, %cst_39 {dimension_numbers = #tpu.dot_dimension_numbers<[1], [0], [0], [1], [0, 0, 1, 1], [], []>} : vector<8x32xf32>, vector<32x32xf32>, vector<8x32xf32> -> vector<8x32xf32>
    %43 = vector.broadcast %41 : vector<1x32xf32> to vector<8x32xf32>
    %44 = arith.addf %42, %43 : vector<8x32xf32>
    %cst_40 = arith.constant 0.000000e+00 : f32
    %45 = vector.broadcast %cst_40 : f32 to vector<8x32xf32>
    %46 = arith.maximumf %44, %45 : vector<8x32xf32>
    %c1_41 = arith.constant 1 : index
    %c0_42 = arith.constant 0 : index
    %c0_43 = arith.constant 0 : index
    %47 = vector.load %arg6[%c1_41, %c0_42, %c0_43] : memref<4x32x4xf32, #tpu.memory_space<vmem>>, vector<1x32x4xf32>
    %48 = vector.shape_cast %47 : vector<1x32x4xf32> to vector<32x4xf32>
    %c1_44 = arith.constant 1 : index
    %c0_45 = arith.constant 0 : index
    %c0_46 = arith.constant 0 : index
    %49 = vector.load %arg7[%c1_44, %c0_45, %c0_46] : memref<4x1x4xf32, #tpu.memory_space<vmem>>, vector<1x1x4xf32>
    %50 = vector.shape_cast %49 : vector<1x1x4xf32> to vector<1x4xf32>
    %cst_47 = arith.constant dense<0.000000e+00> : vector<8x4xf32>
    %51 = tpu.matmul %46, %48, %cst_47 {dimension_numbers = #tpu.dot_dimension_numbers<[1], [0], [0], [1], [0, 0, 1, 1], [], []>} : vector<8x32xf32>, vector<32x4xf32>, vector<8x4xf32> -> vector<8x4xf32>
    %52 = vector.broadcast %50 : vector<1x4xf32> to vector<8x4xf32>
    %53 = arith.addf %51, %52 : vector<8x4xf32>
    %c1_48 = arith.constant 1 : index
    %c0_49 = arith.constant 0 : index
    %c0_50 = arith.constant 0 : index
    %54 = vector.load %arg8[%c1_48, %c0_49, %c0_50] : memref<4x8x4xf32, #tpu.memory_space<vmem>>, vector<1x8x4xf32>
    %55 = vector.shape_cast %54 : vector<1x8x4xf32> to vector<8x4xf32>
    %56 = vector.shape_cast %53 : vector<8x4xf32> to vector<1x8x4xf32>
    tpu.vector_store %arg8[%c1_48, %c0_49, %c0_50], %56 {strides = array<i32>} : memref<4x8x4xf32, #tpu.memory_space<vmem>>, vector<1x8x4xf32>,
    %c2 = arith.constant 2 : index
    %c0_51 = arith.constant 0 : index
    %c0_52 = arith.constant 0 : index
    %57 = vector.load %arg2[%c2, %c0_51, %c0_52] : memref<4x8x32xf32, #tpu.memory_space<vmem>>, vector<1x8x32xf32>
    %58 = vector.shape_cast %57 : vector<1x8x32xf32> to vector<8x32xf32>
    %c2_53 = arith.constant 2 : index
    %c0_54 = arith.constant 0 : index
    %c0_55 = arith.constant 0 : index
    %59 = vector.load %arg3[%c2_53, %c0_54, %c0_55] : memref<4x1x32xf32, #tpu.memory_space<vmem>>, vector<1x1x32xf32>
    %60 = vector.shape_cast %59 : vector<1x1x32xf32> to vector<1x32xf32>
    %cst_56 = arith.constant dense<0.000000e+00> : vector<8x32xf32>
    %61 = tpu.matmul %0, %58, %cst_56 {dimension_numbers = #tpu.dot_dimension_numbers<[1], [0], [0], [1], [0, 0, 1, 1], [], []>} : vector<8x8xf32>, vector<8x32xf32>, vector<8x32xf32> -> vector<8x32xf32>
    %62 = vector.broadcast %60 : vector<1x32xf32> to vector<8x32xf32>
    %63 = arith.addf %61, %62 : vector<8x32xf32>
    %cst_57 = arith.constant 0.000000e+00 : f32
    %64 = vector.broadcast %cst_57 : f32 to vector<8x32xf32>
    %65 = arith.maximumf %63, %64 : vector<8x32xf32>
    %c2_58 = arith.constant 2 : index
    %c0_59 = arith.constant 0 : index
    %c0_60 = arith.constant 0 : index
    %66 = vector.load %arg4[%c2_58, %c0_59, %c0_60] : memref<4x32x32xf32, #tpu.memory_space<vmem>>, vector<1x32x32xf32>
    %67 = vector.shape_cast %66 : vector<1x32x32xf32> to vector<32x32xf32>
    %c2_61 = arith.constant 2 : index
    %c0_62 = arith.constant 0 : index
    %c0_63 = arith.constant 0 : index
    %68 = vector.load %arg5[%c2_61, %c0_62, %c0_63] : memref<4x1x32xf32, #tpu.memory_space<vmem>>, vector<1x1x32xf32>
    %69 = vector.shape_cast %68 : vector<1x1x32xf32> to vector<1x32xf32>
    %cst_64 = arith.constant dense<0.000000e+00> : vector<8x32xf32>
    %70 = tpu.matmul %65, %67, %cst_64 {dimension_numbers = #tpu.dot_dimension_numbers<[1], [0], [0], [1], [0, 0, 1, 1], [], []>} : vector<8x32xf32>, vector<32x32xf32>, vector<8x32xf32> -> vector<8x32xf32>
    %71 = vector.broadcast %69 : vector<1x32xf32> to vector<8x32xf32>
    %72 = arith.addf %70, %71 : vector<8x32xf32>
    %cst_65 = arith.constant 0.000000e+00 : f32
    %73 = vector.broadcast %cst_65 : f32 to vector<8x32xf32>
    %74 = arith.maximumf %72, %73 : vector<8x32xf32>
    %c2_66 = arith.constant 2 : index
    %c0_67 = arith.constant 0 : index
    %c0_68 = arith.constant 0 : index
    %75 = vector.load %arg6[%c2_66, %c0_67, %c0_68] : memref<4x32x4xf32, #tpu.memory_space<vmem>>, vector<1x32x4xf32>
    %76 = vector.shape_cast %75 : vector<1x32x4xf32> to vector<32x4xf32>
    %c2_69 = arith.constant 2 : index
    %c0_70 = arith.constant 0 : index
    %c0_71 = arith.constant 0 : index
    %77 = vector.load %arg7[%c2_69, %c0_70, %c0_71] : memref<4x1x4xf32, #tpu.memory_space<vmem>>, vector<1x1x4xf32>
    %78 = vector.shape_cast %77 : vector<1x1x4xf32> to vector<1x4xf32>
    %cst_72 = arith.constant dense<0.000000e+00> : vector<8x4xf32>
    %79 = tpu.matmul %74, %76, %cst_72 {dimension_numbers = #tpu.dot_dimension_numbers<[1], [0], [0], [1], [0, 0, 1, 1], [], []>} : vector<8x32xf32>, vector<32x4xf32>, vector<8x4xf32> -> vector<8x4xf32>
    %80 = vector.broadcast %78 : vector<1x4xf32> to vector<8x4xf32>
    %81 = arith.addf %79, %80 : vector<8x4xf32>
    %c2_73 = arith.constant 2 : index
    %c0_74 = arith.constant 0 : index
    %c0_75 = arith.constant 0 : index
    %82 = vector.load %arg8[%c2_73, %c0_74, %c0_75] : memref<4x8x4xf32, #tpu.memory_space<vmem>>, vector<1x8x4xf32>
    %83 = vector.shape_cast %82 : vector<1x8x4xf32> to vector<8x4xf32>
    %84 = vector.shape_cast %81 : vector<8x4xf32> to vector<1x8x4xf32>
    tpu.vector_store %arg8[%c2_73, %c0_74, %c0_75], %84 {strides = array<i32>} : memref<4x8x4xf32, #tpu.memory_space<vmem>>, vector<1x8x4xf32>,
    %c3 = arith.constant 3 : index
    %c0_76 = arith.constant 0 : index
    %c0_77 = arith.constant 0 : index
    %85 = vector.load %arg2[%c3, %c0_76, %c0_77] : memref<4x8x32xf32, #tpu.memory_space<vmem>>, vector<1x8x32xf32>
    %86 = vector.shape_cast %85 : vector<1x8x32xf32> to vector<8x32xf32>
    %c3_78 = arith.constant 3 : index
    %c0_79 = arith.constant 0 : index
    %c0_80 = arith.constant 0 : index
    %87 = vector.load %arg3[%c3_78, %c0_79, %c0_80] : memref<4x1x32xf32, #tpu.memory_space<vmem>>, vector<1x1x32xf32>
    %88 = vector.shape_cast %87 : vector<1x1x32xf32> to vector<1x32xf32>
    %cst_81 = arith.constant dense<0.000000e+00> : vector<8x32xf32>
    %89 = tpu.matmul %0, %86, %cst_81 {dimension_numbers = #tpu.dot_dimension_numbers<[1], [0], [0], [1], [0, 0, 1, 1], [], []>} : vector<8x8xf32>, vector<8x32xf32>, vector<8x32xf32> -> vector<8x32xf32>
    %90 = vector.broadcast %88 : vector<1x32xf32> to vector<8x32xf32>
    %91 = arith.addf %89, %90 : vector<8x32xf32>
    %cst_82 = arith.constant 0.000000e+00 : f32
    %92 = vector.broadcast %cst_82 : f32 to vector<8x32xf32>
    %93 = arith.maximumf %91, %92 : vector<8x32xf32>
    %c3_83 = arith.constant 3 : index
    %c0_84 = arith.constant 0 : index
    %c0_85 = arith.constant 0 : index
    %94 = vector.load %arg4[%c3_83, %c0_84, %c0_85] : memref<4x32x32xf32, #tpu.memory_space<vmem>>, vector<1x32x32xf32>
    %95 = vector.shape_cast %94 : vector<1x32x32xf32> to vector<32x32xf32>
    %c3_86 = arith.constant 3 : index
    %c0_87 = arith.constant 0 : index
    %c0_88 = arith.constant 0 : index
    %96 = vector.load %arg5[%c3_86, %c0_87, %c0_88] : memref<4x1x32xf32, #tpu.memory_space<vmem>>, vector<1x1x32xf32>
    %97 = vector.shape_cast %96 : vector<1x1x32xf32> to vector<1x32xf32>
    %cst_89 = arith.constant dense<0.000000e+00> : vector<8x32xf32>
    %98 = tpu.matmul %93, %95, %cst_89 {dimension_numbers = #tpu.dot_dimension_numbers<[1], [0], [0], [1], [0, 0, 1, 1], [], []>} : vector<8x32xf32>, vector<32x32xf32>, vector<8x32xf32> -> vector<8x32xf32>
    %99 = vector.broadcast %97 : vector<1x32xf32> to vector<8x32xf32>
    %100 = arith.addf %98, %99 : vector<8x32xf32>
    %cst_90 = arith.constant 0.000000e+00 : f32
    %101 = vector.broadcast %cst_90 : f32 to vector<8x32xf32>
    %102 = arith.maximumf %100, %101 : vector<8x32xf32>
    %c3_91 = arith.constant 3 : index
    %c0_92 = arith.constant 0 : index
    %c0_93 = arith.constant 0 : index
    %103 = vector.load %arg6[%c3_91, %c0_92, %c0_93] : memref<4x32x4xf32, #tpu.memory_space<vmem>>, vector<1x32x4xf32>
    %104 = vector.shape_cast %103 : vector<1x32x4xf32> to vector<32x4xf32>
    %c3_94 = arith.constant 3 : index
    %c0_95 = arith.constant 0 : index
    %c0_96 = arith.constant 0 : index
    %105 = vector.load %arg7[%c3_94, %c0_95, %c0_96] : memref<4x1x4xf32, #tpu.memory_space<vmem>>, vector<1x1x4xf32>
    %106 = vector.shape_cast %105 : vector<1x1x4xf32> to vector<1x4xf32>
    %cst_97 = arith.constant dense<0.000000e+00> : vector<8x4xf32>
    %107 = tpu.matmul %102, %104, %cst_97 {dimension_numbers = #tpu.dot_dimension_numbers<[1], [0], [0], [1], [0, 0, 1, 1], [], []>} : vector<8x32xf32>, vector<32x4xf32>, vector<8x4xf32> -> vector<8x4xf32>
    %108 = vector.broadcast %106 : vector<1x4xf32> to vector<8x4xf32>
    %109 = arith.addf %107, %108 : vector<8x4xf32>
    %c3_98 = arith.constant 3 : index
    %c0_99 = arith.constant 0 : index
    %c0_100 = arith.constant 0 : index
    %110 = vector.load %arg8[%c3_98, %c0_99, %c0_100] : memref<4x8x4xf32, #tpu.memory_space<vmem>>, vector<1x8x4xf32>
    %111 = vector.shape_cast %110 : vector<1x8x4xf32> to vector<8x4xf32>
    %112 = vector.shape_cast %109 : vector<8x4xf32> to vector<1x8x4xf32>
    tpu.vector_store %arg8[%c3_98, %c0_99, %c0_100], %112 {strides = array<i32>} : memref<4x8x4xf32, #tpu.memory_space<vmem>>, vector<1x8x4xf32>,
    return
  }
  func.func @transform_0(%arg0: i32) -> (i32, i32) {
    %c0_i32 = arith.constant 0 : i32
    %c0_i32_0 = arith.constant 0 : i32
    %c0_i32_1 = arith.constant 0 : i32
    return %c0_i32, %c0_i32_0 : i32, i32
  }
  func.func @transform_1(%arg0: i32) -> (i32, i32, i32) {
    %c0_i32 = arith.constant 0 : i32
    %c0_i32_0 = arith.constant 0 : i32
    %c0_i32_1 = arith.constant 0 : i32
    return %arg0, %c0_i32, %c0_i32_0 : i32, i32, i32
  }
  func.func @transform_2(%arg0: i32) -> (i32, i32, i32) {
    %c0_i32 = arith.constant 0 : i32
    %c0_i32_0 = arith.constant 0 : i32
    %c0_i32_1 = arith.constant 0 : i32
    return %arg0, %c0_i32, %c0_i32_0 : i32, i32, i32
  }
  func.func @transform_3(%arg0: i32) -> (i32, i32, i32) {
    %c0_i32 = arith.constant 0 : i32
    %c0_i32_0 = arith.constant 0 : i32
    %c0_i32_1 = arith.constant 0 : i32
    return %arg0, %c0_i32, %c0_i32_0 : i32, i32, i32
  }
  func.func @transform_4(%arg0: i32) -> (i32, i32, i32) {
    %c0_i32 = arith.constant 0 : i32
    %c0_i32_0 = arith.constant 0 : i32
    %c0_i32_1 = arith.constant 0 : i32
    return %arg0, %c0_i32, %c0_i32_0 : i32, i32, i32
  }
  func.func @transform_5(%arg0: i32) -> (i32, i32, i32) {
    %c0_i32 = arith.constant 0 : i32
    %c0_i32_0 = arith.constant 0 : i32
    %c0_i32_1 = arith.constant 0 : i32
    return %arg0, %c0_i32, %c0_i32_0 : i32, i32, i32
  }
  func.func @transform_6(%arg0: i32) -> (i32, i32, i32) {
    %c0_i32 = arith.constant 0 : i32
    %c0_i32_0 = arith.constant 0 : i32
    %c0_i32_1 = arith.constant 0 : i32
    return %arg0, %c0_i32, %c0_i32_0 : i32, i32, i32
  }
  func.func @transform_7(%arg0: i32) -> (i32, i32, i32) {
    %c0_i32 = arith.constant 0 : i32
    %c0_i32_0 = arith.constant 0 : i32
    %c0_i32_1 = arith.constant 0 : i32
    return %arg0, %c0_i32, %c0_i32_0 : i32, i32, i32
  }
}

</mosaic_0001>

<bundles_post_ra>
// kernel: _lambda_.1
= control target key start
LH: loop header
LB: loop body
LE: loop exit
PB: predicated region body
PF: predicated region fallthrough
CT: control target
= control target key end

     0   :  { %12 = vsyncpa [#allocation3], 0  ;;  %s524_s27 = smov [#allocation2]   ;;  %s525_s29 = smov 128   ;;  %s739_s0 = inlined_call_operand.vmem [shape: f32[8,8], index: 0, kind: input, shape index: {}]   ;;  %s740_s1 = inlined_call_operand.hbm [shape: f32[4,8,32], index: 1, kind: input, shape index: {}]   ;;  %s741_s2 = inlined_call_operand.vmem [shape: f32[4,1,32], index: 2, kind: input, shape index: {}]   ;;  %s742_s3 = inlined_call_operand.vmem [shape: f32[4,32,32], index: 3, kind: input, shape index: {}]   ;;  %s743_s4 = inlined_call_operand.vmem [shape: f32[4,1,32], index: 4, kind: input, shape index: {}]   ;;  %s744_s5 = inlined_call_operand.vmem [shape: f32[4,32,4], index: 5, kind: input, shape index: {}]   ;;  %s745_s6 = inlined_call_operand.vmem [shape: f32[4,1,4], index: 6, kind: input, shape index: {}]   ;;  %s746_s7 = inlined_call_operand.vmem [shape: f32[4,8,4], index: 7, kind: output, shape index: {}]  }
   0x1   :  { %s19_s26 = sshll.u32 %s740_s1, 4  ;;  %s21_s28 = sshll.u32 %s524_s27, 4  ;;  %s20_s26 = int_to_ptr.hbm [resolvable:$true] %s19_s26  ;;  %s22_s28 = int_to_ptr.vmem [resolvable:$true] %s21_s28 }
   0x2   :  { %s526_s30 = smov 8  }
   0x3   :  { %27 = dma.hbm_to_vmem [thread:$0]  %s20_s26, 512, %s22_s28, [#allocation3], %s525_s29, %s525_s29, %s526_s30  }
   0x4   :  { %522 = dma.done.wait [#allocation3], 512  }
   0x5   :  { %523 = vsyncadd [#allocation3], 4294966784  ;;  %vm48_vm0 = vcmask 64512   ;;  %v140_v0 = vld [vmem:[#allocation2 + $0x8] sm:$0xff]  ;;  %v573_v1 = vld [vmem:[%s739_s0] sm:$0xff]  ;;  %vm81_vm1 = vcmask 261120  }
   0x6   :  { %v43_v2 = vld [vmem:[#allocation2] sm:$0xff]  ;;  %161 = vmatpush.msra.mxu3 %v140_v0  ;;  %v443_v3 = vld [vmem:[%s742_s3 + $0x38] sm:$0xff]  ;;  %v442_v4 = vld [vmem:[%s742_s3 + $0x30] sm:$0xff]  ;;  %vm137_vm2 = vcmask 31744  }
   0x7   :  { %67 = vmatpush.msra.mxu0 %v43_v2  ;;  %439 = vmatmul.msk.f32.vlgmr.msra.gmra.mxu3 %vm48_vm0, %v573_v1  ;;  %v441_v5 = vld [vmem:[%s742_s3 + $0x28] sm:$0xff]  ;;  %v440_v6 = vld [vmem:[%s742_s3 + $0x20] sm:$0xff]  ;;  %v76_v7 = vld [vmem:[%s742_s3 + $0x18] sm:$0xff] }
   0x8   :  { %435 = vmatmul.msk.f32.vlgmr.msra.gmra.mxu0 %vm48_vm0, %v573_v1  ;;  %v75_v8 = vld [vmem:[%s742_s3 + $0x10] sm:$0xff]  ;;  %97 = vmatpush.msra.mxu1 %v76_v7  ;;  %v449_v9 = vld [vmem:[%s744_s5 + $0x38] sm:$0xff]  ;;  %v74_v10 = vld [vmem:[%s742_s3 + $0x8] sm:$0xff] }
   0x9   :  { %192 = vmatpush.msrb.mxu0 %v443_v3  ;;  %226 = vmatpush.msrb.mxu3 %v449_v9  ;;  %v448_v11 = vld [vmem:[%s744_s5 + $0x30] sm:$0xff]  ;;  %v73_v12 = vld [vmem:[%s742_s3] sm:$0xff]  ;;  %v447_v21 = vld [vmem:[%s744_s5 + $0x28] sm:$0xff] }
   0xa   :  { %98 = vmatpush.msra.mxu1 %v75_v8  ;;  %v487_v13 = vld [vmem:[%s741_s2] ss:$0 sm:$0xff]  ;;  %v486_v16 = vld [vmem:[%s741_s2 + $0x1] ss:$0 sm:$0xff]  ;;  %v334_v23 = vld [vmem:[#allocation2 + $0x18] sm:$0xff] }
   0xb   :  { %193 = vmatpush.msrb.mxu0 %v442_v4  ;;  %227 = vmatpush.msrb.mxu3 %v448_v11  ;;  %v446_v22 = vld [vmem:[%s744_s5 + $0x20] sm:$0xff]  ;;  %v237_v24 = vld [vmem:[#allocation2 + $0x10] sm:$0xff]  ;;  %v109_v25 = vld [vmem:[%s744_s5 + $0x18] sm:$0xff] }
   0xc   :  { %99 = vmatpush.msra.mxu1 %v74_v10  ;;  %v108_v26 = vld [vmem:[%s744_s5 + $0x10] sm:$0xff]  ;;  %129 = vmatpush.msra.mxu2 %v109_v25  ;;  %v107_v27 = vld [vmem:[%s744_s5 + $0x8] sm:$0xff]  ;;  %v106_v28 = vld [vmem:[%s744_s5] sm:$0xff] }
   0xd   :  { %194 = vmatpush.msrb.mxu0 %v441_v5  ;;  %228 = vmatpush.msrb.mxu3 %v447_v21  ;;  %v489_v29 = vld [vmem:[%s743_s4] ss:$0 sm:$0xff]  ;;  %v488_v32 = vld [vmem:[%s743_s4 + $0x1] ss:$0 sm:$0xff]  ;;  %v458_v37 = vld [vmem:[%s742_s3 + $0x58] sm:$0xff] }
   0xe   :  { %100 = vmatpush.msra.mxu1 %v73_v12  ;;  %130 = vmatpush.msra.mxu2 %v108_v26  ;;  %v473_v38 = vld [vmem:[%s742_s3 + $0x78] sm:$0xff]  ;;  %v457_v39 = vld [vmem:[%s742_s3 + $0x50] sm:$0xff]  ;;  %v491_v42 = vld [vmem:[%s741_s2 + $0x2] ss:$0 sm:$0xff] }
   0xf   :  { %195 = vmatpush.msrb.mxu0 %v440_v6  ;;  %229 = vmatpush.msrb.mxu3 %v446_v22  ;;  %v472_v41 = vld [vmem:[%s742_s3 + $0x70] sm:$0xff]  ;;  %v456_v45 = vld [vmem:[%s742_s3 + $0x48] sm:$0xff]  ;;  %v455_v47 = vld [vmem:[%s742_s3 + $0x40] sm:$0xff] }
  0x10   :  { %258 = vmatpush.msrb.mxu1 %v237_v24  ;;  %131 = vmatpush.msra.mxu2 %v107_v27  ;;  %v471_v46 = vld [vmem:[%s742_s3 + $0x68] sm:$0xff]  ;;  %v470_v48 = vld [vmem:[%s742_s3 + $0x60] sm:$0xff]  ;;  %v479_v49 = vld [vmem:[%s744_s5 + $0x78] sm:$0xff] }
  0x11   :  { %355 = vmatpush.msra.mxu3 %v334_v23  ;;  %v478_v50 = vld [vmem:[%s744_s5 + $0x70] sm:$0xff]  ;;  %v493_v51 = vld [vmem:[%s745_s6] ss:$0 sm:$0xff]  ;;  %v490_v54 = vld [vmem:[%s745_s6 + $0x1] ss:$0 sm:$0xff] }
  0x12   :  { %132 = vmatpush.msra.mxu2 %v106_v28  ;;  %v492_v57 = vld [vmem:[%s741_s2 + $0x3] ss:$0 sm:$0xff]  ;;  %v477_v61 = vld [vmem:[%s744_s5 + $0x68] sm:$0xff]  ;;  %v464_v62 = vld [vmem:[%s744_s5 + $0x58] sm:$0xff] }
  0x13   :  { %v476_v63 = vld [vmem:[%s744_s5 + $0x60] sm:$0xff]  ;;  %v463_v0 = vld [vmem:[%s744_s5 + $0x50] sm:$0xff]  ;;  %323 = vmatpush.msra.mxu0 %v464_v62  ;;  %v462_v2 = vld [vmem:[%s744_s5 + $0x48] sm:$0xff] }
  0x14   :  { %289 = vmatpush.msrb.mxu2 %v458_v37  ;;  %v461_v5 = vld [vmem:[%s744_s5 + $0x40] sm:$0xff] }
  0x15   :  { %324 = vmatpush.msra.mxu0 %v463_v0  ;;  %v494_v7 = vld [vmem:[%s743_s4 + $0x3] ss:$0 sm:$0xff]  ;;  %v496_v11 = vld [vmem:[%s745_s6 + $0x2] ss:$0 sm:$0xff] }
  0x16   :  { %290 = vmatpush.msrb.mxu2 %v457_v39 }
  0x17   :  { %325 = vmatpush.msra.mxu0 %v462_v2 }
  0x18   :  { %291 = vmatpush.msrb.mxu2 %v456_v45 }
  0x19   :  { %326 = vmatpush.msra.mxu0 %v461_v5 }
  0x1a   :  { %292 = vmatpush.msrb.mxu2 %v455_v47 }
  0x85   :  { %v69_v14 = vpop.f32.mrf.mxu0 }
  0x86   :  { %v70_v15 = vadd.f32 %v487_v13, %v69_v14  ;;  %v497_v14 = vld [vmem:[%s745_s6 + $0x3] ss:$0 sm:$0xff] }
  0x88   :  { %v72_v17 = vmax.f32 %v70_v15, 0.0 }
  0x8a   :  { %436 = vmatmul.msk.f32.vlgmr.msra.gmra.mxu1 %vm81_vm1, %v72_v17  ;;  %v163_v18 = vpop.f32.mrf.mxu3 }
  0x8b   :  { %v164_v19 = vadd.f32 %v486_v16, %v163_v18  ;;  %386 = vmatpush.msra.mxu1 %v473_v38 }
  0x8d   :  { %v166_v20 = vmax.f32 %v164_v19, 0.0  ;;  %387 = vmatpush.msra.mxu1 %v472_v41 }
  0x8f   :  { %445 = vmatmul.msk.f32.vlgmr.msrb.gmra.mxu0 %vm81_vm1, %v166_v20  ;;  %388 = vmatpush.msra.mxu1 %v471_v46 }
  0x91   :  { %389 = vmatpush.msra.mxu1 %v470_v48 }
  0x92   :  { %454 = vmatmul.msk.f32.vlgmr.msrb.gmra.mxu1 %vm48_vm0, %v573_v1 }
 0x107   :  { %v102_v30 = vpop.f32.mrf.mxu1 }
 0x108   :  { %v103_v31 = vadd.f32 %v489_v29, %v102_v30 }
 0x10a   :  { %v105_v33 = vmax.f32 %v103_v31, 0.0 }
 0x10c   :  { %437 = vmatmul.msk.f32.vlgmr.msra.gmra.mxu2 %vm81_vm1, %v105_v33  ;;  %v197_v34 = vpop.f32.mrf.mxu0 }
 0x10d   :  { %v198_v35 = vadd.f32 %v488_v32, %v197_v34  ;;  %420 = vmatpush.msra.mxu2 %v479_v49 }
 0x10f   :  { %v200_v36 = vmax.f32 %v198_v35, 0.0  ;;  %v260_v40 = vpop.f32.mrf.mxu1  ;;  %421 = vmatpush.msra.mxu2 %v478_v50 }
 0x110   :  { %v261_v43 = vadd.f32 %v491_v42, %v260_v40 }
 0x111   :  { %451 = vmatmul.msk.f32.vlgmr.msrb.gmra.mxu3 %vm81_vm1, %v200_v36  ;;  %422 = vmatpush.msra.mxu2 %v477_v61 }
 0x112   :  { %v263_v44 = vmax.f32 %v261_v43, 0.0 }
 0x113   :  { %423 = vmatpush.msra.mxu2 %v476_v63 }
 0x114   :  { %460 = vmatmul.msk.f32.vlgmr.msrb.gmra.mxu2 %vm81_vm1, %v263_v44 }
 0x119   :  { %469 = vmatmul.msk.f32.vlgmr.msra.gmra.mxu3 %vm48_vm0, %v573_v1  ;;  %v495_v1 = vld [vmem:[%s743_s4 + $0x2] ss:$0 sm:$0xff] }
 0x18f   :  { %v134_v52 = vpop.f32.mrf.mxu2 }
 0x190   :  { %v135_v53 = vadd.f32 %v493_v51, %v134_v52 }
 0x192   :  { %138 = vst.msk [vmem:[%s746_s7] sm:$0xff] %vm137_vm2, %v135_v53 }
 0x194   :  { %v231_v55 = vpop.f32.mrf.mxu3 }
 0x195   :  { %v232_v56 = vadd.f32 %v490_v54, %v231_v55 }
 0x197   :  { %452 = vst.msk [vmem:[%s746_s7 + $0x8] sm:$0xff] %vm137_vm2, %v232_v56  ;;  %v294_v3 = vpop.f32.mrf.mxu2 }
 0x198   :  { %v295_v4 = vadd.f32 %v495_v1, %v294_v3 }
 0x19a   :  { %v297_v6 = vmax.f32 %v295_v4, 0.0 }
 0x19c   :  { %v357_v58 = vpop.f32.mrf.mxu3  ;;  %466 = vmatmul.msk.f32.vlgmr.msra.gmra.mxu0 %vm81_vm1, %v297_v6 }
 0x19d   :  { %v358_v59 = vadd.f32 %v492_v57, %v357_v58 }
 0x19f   :  { %v360_v60 = vmax.f32 %v358_v59, 0.0 }
 0x1a1   :  { %475 = vmatmul.msk.f32.vlgmr.msra.gmra.mxu1 %vm81_vm1, %v360_v60 }
 0x219   :  { %v328_v12 = vpop.f32.mrf.mxu0 }
 0x21a   :  { %v329_v13 = vadd.f32 %v496_v11, %v328_v12 }
 0x21c   :  { %467 = vst.msk [vmem:[%s746_s7 + $0x10] sm:$0xff] %vm137_vm2, %v329_v13 }
 0x21e   :  { %v391_v8 = vpop.f32.mrf.mxu1 }
 0x21f   :  { %v392_v9 = vadd.f32 %v494_v7, %v391_v8 }
 0x221   :  { %v394_v10 = vmax.f32 %v392_v9, 0.0 }
 0x223   :  { %481 = vmatmul.msk.f32.vlgmr.msra.gmra.mxu2 %vm81_vm1, %v394_v10 }
 0x2a6   :  { %v425_v15 = vpop.f32.mrf.mxu2 }
 0x2a7   :  { %v426_v16 = vadd.f32 %v497_v14, %v425_v15 }
 0x2a9   :  { %482 = vst.msk [vmem:[%s746_s7 + $0x18] sm:$0xff] %vm137_vm2, %v426_v16 }
 0x2aa   :  { %434 = vsyncpa [#allocation3], 1 }

</bundles_post_ra>
